<compile_context>
chip_gen: v7x
topology: tpu7x:2x2x1
jax: 0.10.0
libtpu: 0.0.40
codegen_flags: <defaults>
</compile_context>

<pallas_src>
import functools

import jax
import jax.numpy as jnp
from jax.experimental import pallas as pl
from jax.experimental.pallas import tpu as pltpu

LN_EPS = 1e-12      # BertConfig.layer_norm_eps default
NORM_EPS = 1e-12    # F.normalize default eps
OUT_LANE = 128      # lane-dense padded output width (>= out_dim)


def _round_up(x, m):
    return ((x + m - 1) // m) * m


# --------------------------- shared math helpers ----------------------------

def _layer_norm(x, g, b, eps=LN_EPS):
    mu = jnp.mean(x, axis=-1, keepdims=True)
    xc = x - mu
    var = jnp.mean(xc * xc, axis=-1, keepdims=True)
    return xc * jax.lax.rsqrt(var + eps) * g + b


def _gelu_tanh(x):
    # TODO(synk): tanh approximation of GELU (HF default is exact erf-gelu).
    c = 0.7978845608028654  # sqrt(2/pi)
    return 0.5 * x * (1.0 + jnp.tanh(c * (x + 0.044715 * x * x * x)))


# ------------------------------ Pallas kernel --------------------------------

def _user_tower_kernel(feat_ref, search_ref, wf_ref, headv_ref,
                       wattn_ref, wi_ref, wo2_ref, layerv_ref, bi_ref,
                       wfu_ref, wfs_ref, bfuse_ref, out_ref, *, num_layers):
    # feature_proj (emb_add pre-folded into its bias) + BertEmbeddings LayerNorm.
    x = jnp.dot(feat_ref[...], wf_ref[...],
                preferred_element_type=jnp.float32) + headv_ref[0:1, :]
    x = _layer_norm(x, headv_ref[1:2, :], headv_ref[2:3, :])

    for l in range(num_layers):          # static unroll (num_layers == 2)
        # seq_len == 1: softmax over a single key == 1 -> attention == V path;
        # Wv@Wao (+ bv@Wao + bao) pre-folded on host into one matmul (exact).
        attn = (jnp.dot(x.astype(jnp.bfloat16), wattn_ref[l],
                        preferred_element_type=jnp.float32)
                + layerv_ref[l, 0:1, :])
        x = _layer_norm(attn + x, layerv_ref[l, 2:3, :], layerv_ref[l, 3:4, :])
        # feed-forward block
        h = _gelu_tanh(jnp.dot(x.astype(jnp.bfloat16), wi_ref[l],
                               preferred_element_type=jnp.float32) + bi_ref[l])
        y = (jnp.dot(h.astype(jnp.bfloat16), wo2_ref[l],
                     preferred_element_type=jnp.float32)
             + layerv_ref[l, 1:2, :])
        x = _layer_norm(y + x, layerv_ref[l, 4:5, :], layerv_ref[l, 5:6, :])

    # pooler folded into the user branch of search_fusion (Wp@Wfu, bp@Wfu folded);
    # weights/bias are zero-padded to OUT_LANE lanes so the store is lane-dense.
    fused = (jnp.dot(x.astype(jnp.bfloat16), wfu_ref[...],
                     preferred_element_type=jnp.float32)
             + jnp.dot(search_ref[...], wfs_ref[...],
                       preferred_element_type=jnp.float32)
             + bfuse_ref[...])
    fused = jnp.maximum(fused, 0.0)

    # F.normalize(dim=1); padded lanes are exactly zero so they don't affect ||.||.
    ss = jnp.sum(fused * fused, axis=-1, keepdims=True)
    out_ref[...] = fused * jax.lax.rsqrt(jnp.maximum(ss, NORM_EPS * NORM_EPS))


# --------------------- host-side fold / pack / cast --------------------------

def prepare_kernel_params(p):
    """Exact algebraic folds + operand packing + bf16 weight cast (host side)."""
    out_dim = p["wp"].shape[1]
    pad = OUT_LANE - out_dim

    kp = {}
    kp["wf"] = p["wf"].astype(jnp.bfloat16)
    # head_vecs rows: [bf + emb_add, emb_ln_gamma, emb_ln_beta]
    kp["head_vecs"] = jnp.concatenate(
        [p["bf"] + p["emb_add"], p["emb_ln_g"], p["emb_ln_b"]], axis=0)

    # seq_len==1 attention fold: Wv @ Wao,  bv @ Wao + bao   (exact)
    wattn = jnp.einsum("lij,ljk->lik", p["wv"], p["wao"])
    battn = jnp.einsum("lij,ljk->lik", p["bv"], p["wao"]) + p["bao"]   # (L,1,H)
    kp["wattn"] = wattn.astype(jnp.bfloat16)
    kp["wi"] = p["wi"].astype(jnp.bfloat16)
    kp["wo2"] = p["wo2"].astype(jnp.bfloat16)
    kp["bi"] = p["bi"]                                                  # (L,1,4H)
    # layer_vecs rows: [battn, bo2, ln1_g, ln1_b, ln2_g, ln2_b]  -> (L, 6, H)
    kp["layer_vecs"] = jnp.concatenate(
        [battn, p["bo2"], p["ln1_g"], p["ln1_b"], p["ln2_g"], p["ln2_b"]], axis=1)

    # pooler folded into search_fusion user branch (exact), lane-padded to OUT_LANE.
    wfu_fold = p["wp"] @ p["wfu"]                     # (H, out_dim)
    bfuse = p["bp"] @ p["wfu"] + p["bfus"]            # (1, out_dim)
    kp["wfu"] = jnp.pad(wfu_fold, ((0, 0), (0, pad))).astype(jnp.bfloat16)
    kp["wfs"] = jnp.pad(p["wfs"], ((0, 0), (0, pad))).astype(jnp.bfloat16)
    kp["bfuse"] = jnp.pad(bfuse, ((0, 0), (0, pad)))
    return kp


# ------------------------------- wrapper --------------------------------------

def enhanced_user_tower_forward(params, encoding, *, user_input_dim, num_layers,
                                block_b=512):
    B = encoding.shape[0]
    out_dim = params["wp"].shape[1]
    hidden = params["wf"].shape[1]
    search_dim = encoding.shape[1] - user_input_dim

    kp = prepare_kernel_params(params)

    # split + bf16 cast + batch pad in the wrapper (free layout plumbing).
    b_pad = _round_up(max(B, 8), 8)
    blk = min(block_b, b_pad)
    b_pad = _round_up(b_pad, blk)
    feat = encoding[:, :user_input_dim].astype(jnp.bfloat16)
    search = encoding[:, user_input_dim:].astype(jnp.bfloat16)
    if b_pad != B:
        feat = jnp.pad(feat, ((0, b_pad - B), (0, 0)))
        search = jnp.pad(search, ((0, b_pad - B), (0, 0)))
    grid = (b_pad // blk,)

    def _resident(shape):
        n = len(shape)
        return pl.BlockSpec(shape, lambda i, n=n: (0,) * n)

    in_specs = [
        pl.BlockSpec((blk, user_input_dim), lambda i: (i, 0)),   # feat  (streamed)
        pl.BlockSpec((blk, search_dim), lambda i: (i, 0)),       # search (streamed)
        _resident(kp["wf"].shape),
        _resident(kp["head_vecs"].shape),
        _resident(kp["wattn"].shape),
        _resident(kp["wi"].shape),
        _resident(kp["wo2"].shape),
        _resident(kp["layer_vecs"].shape),
        _resident(kp["bi"].shape),
        _resident(kp["wfu"].shape),
        _resident(kp["wfs"].shape),
        _resident(kp["bfuse"].shape),
    ]
    out_specs = pl.BlockSpec((blk, OUT_LANE), lambda i: (i, 0))

    flops = 2 * b_pad * (user_input_dim * hidden
                         + num_layers * (hidden * hidden + 2 * hidden * 4 * hidden)
                         + (hidden + search_dim) * OUT_LANE)
    transcendentals = b_pad * (num_layers * 4 * hidden + 2 * num_layers + 2)
    weight_bytes = sum(int(v.size) * v.dtype.itemsize for v in kp.values())
    bytes_accessed = (int(feat.size) * 2 + int(search.size) * 2
                      + b_pad * OUT_LANE * 4 + weight_bytes)

    out_padded = pl.pallas_call(
        functools.partial(_user_tower_kernel, num_layers=num_layers),
        out_shape=jax.ShapeDtypeStruct((b_pad, OUT_LANE), jnp.float32),
        grid=grid,
        in_specs=in_specs,
        out_specs=out_specs,
        compiler_params=pltpu.CompilerParams(
            dimension_semantics=("parallel",),          # v7x: shard over both TCs
            vmem_limit_bytes=32 * 1024 * 1024),         # safe on v5e/v6e/v7x
        cost_estimate=pl.CostEstimate(
            flops=int(flops),
            transcendentals=int(transcendentals),
            bytes_accessed=int(bytes_accessed)),
    )(feat, search, kp["wf"], kp["head_vecs"], kp["wattn"], kp["wi"], kp["wo2"],
      kp["layer_vecs"], kp["bi"], kp["wfu"], kp["wfs"], kp["bfuse"])

    return out_padded[:B, :out_dim]


# ------------------------------ parameter init -------------------------------

def _linear(key, din, dout, scale=0.05):
    kw, kb = jax.random.split(key)
    return (jax.random.normal(kw, (din, dout), jnp.float32) * scale,
            jax.random.normal(kb, (1, dout), jnp.float32) * scale)


def init_params(key, user_input_dim, search_emb_dim, hidden, out_dim, num_layers):
    keys = jax.random.split(key, 6 + 4 * num_layers + 4)
    p = {}
    p["wf"], p["bf"] = _linear(keys[0], user_input_dim, hidden)
    # position_embeddings[0] + token_type_embeddings[0] folded into one vector
    p["emb_add"] = jax.random.normal(keys[1], (1, hidden), jnp.float32) * 0.02
    p["emb_ln_g"] = jnp.ones((1, hidden), jnp.float32)
    p["emb_ln_b"] = jnp.zeros((1, hidden), jnp.float32)

    wv, bv, wao, bao, wi, bi, wo2, bo2 = [], [], [], [], [], [], [], []
    ln1g, ln1b, ln2g, ln2b = [], [], [], []
    k = 2
    for _ in range(num_layers):
        w, b = _linear(keys[k], hidden, hidden); wv.append(w); bv.append(b); k += 1
        w, b = _linear(keys[k], hidden, hidden); wao.append(w); bao.append(b); k += 1
        w, b = _linear(keys[k], hidden, 4 * hidden); wi.append(w); bi.append(b); k += 1
        w, b = _linear(keys[k], 4 * hidden, hidden); wo2.append(w); bo2.append(b); k += 1
        ln1g.append(jnp.ones((1, hidden), jnp.float32))
        ln1b.append(jnp.zeros((1, hidden), jnp.float32))
        ln2g.append(jnp.ones((1, hidden), jnp.float32))
        ln2b.append(jnp.zeros((1, hidden), jnp.float32))
    p["wv"], p["bv"] = jnp.stack(wv), jnp.stack(bv)
    p["wao"], p["bao"] = jnp.stack(wao), jnp.stack(bao)
    p["wi"], p["bi"] = jnp.stack(wi), jnp.stack(bi)
    p["wo2"], p["bo2"] = jnp.stack(wo2), jnp.stack(bo2)
    p["ln1_g"], p["ln1_b"] = jnp.stack(ln1g), jnp.stack(ln1b)
    p["ln2_g"], p["ln2_b"] = jnp.stack(ln2g), jnp.stack(ln2b)

    p["wp"], p["bp"] = _linear(keys[k], hidden, out_dim); k += 1
    # search_fusion Linear(out_dim + search_emb_dim -> out_dim): weight split into a
    # user_emb block (wfu) and a search_emb block (wfs) == concat-then-matmul.
    p["wfu"], p["bfus"] = _linear(keys[k], out_dim, out_dim); k += 1
    p["wfs"], _ = _linear(keys[k], search_emb_dim, out_dim); k += 1
    return p


# --------------------------- pure-JAX reference ------------------------------
# Un-folded, all-f32 original math: validates the Wv@Wao / Wp@Wfu / emb_add folds.

def reference_forward(params, encoding, *, user_input_dim, num_layers):
    feat = encoding[:, :user_input_dim]
    search = encoding[:, user_input_dim:]
    x = feat @ params["wf"] + params["bf"]
    x = _layer_norm(x + params["emb_add"], params["emb_ln_g"], params["emb_ln_b"])
    for l in range(num_layers):
        v = x @ params["wv"][l] + params["bv"][l]
        a = v @ params["wao"][l] + params["bao"][l]
        x = _layer_norm(a + x, params["ln1_g"][l], params["ln1_b"][l])
        h = _gelu_tanh(x @ params["wi"][l] + params["bi"][l])
        y = h @ params["wo2"][l] + params["bo2"][l]
        x = _layer_norm(y + x, params["ln2_g"][l], params["ln2_b"][l])
    user = x @ params["wp"] + params["bp"]
    fused = jnp.maximum(user @ params["wfu"] + search @ params["wfs"]
                        + params["bfus"], 0.0)
    nrm = jnp.sqrt(jnp.sum(fused * fused, axis=-1, keepdims=True))
    return fused / jnp.maximum(nrm, NORM_EPS)


# ----------------------------------- main -------------------------------------

if __name__ == "__main__":
    B = 2
    user_input_dim = 32
    search_emb_dim = 32
    input_dim = user_input_dim + search_emb_dim   # with_search=True split
    hidden_dim = 64
    out_dim = 32
    num_layers = 2
    num_heads = 4   # unused: with seq_len == 1 attention is head-independent

    root = jax.random.PRNGKey(0)
    k_param, k_enc = jax.random.split(root)
    params = init_params(k_param, user_input_dim, search_emb_dim, hidden_dim,
                         out_dim, num_layers)
    encoding = jax.random.normal(k_enc, (B, input_dim), jnp.float32)

    out = enhanced_user_tower_forward(params, encoding,
                                      user_input_dim=user_input_dim,
                                      num_layers=num_layers)
    out = jax.block_until_ready(out)

    ref = jax.block_until_ready(
        reference_forward(params, encoding, user_input_dim=user_input_dim,
                          num_layers=num_layers))

    assert out.shape == (B, out_dim)
    # rows of the normalized output have unit L2 norm
    assert bool(jnp.allclose(jnp.linalg.norm(out, axis=1), 1.0, atol=1e-3))
    # matches the un-folded fp32 reference up to bf16 matmul rounding
    max_diff = float(jnp.max(jnp.abs(out - ref)))
    assert max_diff < 2e-2, max_diff
    print("KERNEL_OK")
</pallas_src>

<mosaic_0001>
module attributes {stable_mosaic.version = 11 : i64} {
  func.func @_user_tower_kernel(%arg0: i32, %arg1: memref<8x32xbf16, #tpu.memory_space<vmem>>, %arg2: memref<8x32xbf16, #tpu.memory_space<vmem>>, %arg3: memref<32x64xbf16, #tpu.memory_space<vmem>>, %arg4: memref<3x64xf32, #tpu.memory_space<vmem>>, %arg5: memref<2x64x64xbf16, #tpu.memory_space<vmem>>, %arg6: memref<2x64x256xbf16, #tpu.memory_space<vmem>>, %arg7: memref<2x256x64xbf16, #tpu.memory_space<vmem>>, %arg8: memref<2x6x64xf32, #tpu.memory_space<vmem>>, %arg9: memref<2x1x256xf32, #tpu.memory_space<vmem>>, %arg10: memref<64x128xbf16, #tpu.memory_space<vmem>>, %arg11: memref<32x128xbf16, #tpu.memory_space<vmem>>, %arg12: memref<1x128xf32, #tpu.memory_space<vmem>>, %arg13: memref<8x128xf32, #tpu.memory_space<vmem>>) attributes {dimension_semantics = [#tpu.dimension_semantics<parallel>], iteration_bounds = array<i64: 1>, scalar_prefetch = 0 : i64, scratch_operands = 0 : i64, tpu.core_type = #tpu.core_type<tc>, window_params = [{transform_indices = @transform_0, window_bounds = array<i64: 8, 32>}, {transform_indices = @transform_1, window_bounds = array<i64: 8, 32>}, {pipeline_mode = #tpu.pipeline_mode<synchronous>, transform_indices = @transform_2, window_bounds = array<i64: 32, 64>}, {pipeline_mode = #tpu.pipeline_mode<synchronous>, transform_indices = @transform_3, window_bounds = array<i64: 3, 64>}, {pipeline_mode = #tpu.pipeline_mode<synchronous>, transform_indices = @transform_4, window_bounds = array<i64: 2, 64, 64>}, {pipeline_mode = #tpu.pipeline_mode<synchronous>, transform_indices = @transform_5, window_bounds = array<i64: 2, 64, 256>}, {pipeline_mode = #tpu.pipeline_mode<synchronous>, transform_indices = @transform_6, window_bounds = array<i64: 2, 256, 64>}, {pipeline_mode = #tpu.pipeline_mode<synchronous>, transform_indices = @transform_7, window_bounds = array<i64: 2, 6, 64>}, {pipeline_mode = #tpu.pipeline_mode<synchronous>, transform_indices = @transform_8, window_bounds = array<i64: 2, 1, 256>}, {pipeline_mode = #tpu.pipeline_mode<synchronous>, transform_indices = @transform_9, window_bounds = array<i64: 64, 128>}, {pipeline_mode = #tpu.pipeline_mode<synchronous>, transform_indices = @transform_10, window_bounds = array<i64: 32, 128>}, {pipeline_mode = #tpu.pipeline_mode<synchronous>, transform_indices = @transform_11, window_bounds = array<i64: 1, 128>}, {transform_indices = @transform_12, window_bounds = array<i64: 8, 128>}]} {
    %c0 = arith.constant 0 : index
    %c0_0 = arith.constant 0 : index
    %0 = vector.load %arg1[%c0, %c0_0] : memref<8x32xbf16, #tpu.memory_space<vmem>>, vector<8x32xbf16>
    %c0_1 = arith.constant 0 : index
    %c0_2 = arith.constant 0 : index
    %1 = vector.load %arg3[%c0_1, %c0_2] : memref<32x64xbf16, #tpu.memory_space<vmem>>, vector<32x64xbf16>
    %cst = arith.constant dense<0.000000e+00> : vector<8x64xf32>
    %2 = tpu.matmul %0, %1, %cst {dimension_numbers = #tpu.dot_dimension_numbers<[1], [0], [0], [1], [0, 0, 1, 1], [], []>} : vector<8x32xbf16>, vector<32x64xbf16>, vector<8x64xf32> -> vector<8x64xf32>
    %c0_3 = arith.constant 0 : index
    %c0_4 = arith.constant 0 : index
    %3 = vector.load %arg4[%c0_3, %c0_4] : memref<3x64xf32, #tpu.memory_space<vmem>>, vector<1x64xf32>
    %4 = vector.broadcast %3 : vector<1x64xf32> to vector<8x64xf32>
    %5 = arith.addf %2, %4 : vector<8x64xf32>
    %c1 = arith.constant 1 : index
    %c0_5 = arith.constant 0 : index
    %6 = vector.load %arg4[%c1, %c0_5] : memref<3x64xf32, #tpu.memory_space<vmem>>, vector<1x64xf32>
    %c2 = arith.constant 2 : index
    %c0_6 = arith.constant 0 : index
    %7 = vector.load %arg4[%c2, %c0_6] : memref<3x64xf32, #tpu.memory_space<vmem>>, vector<1x64xf32>
    %cst_7 = arith.constant dense<0.000000e+00> : vector<8xf32>
    %8 = vector.multi_reduction <add>, %5, %cst_7 [1] : vector<8x64xf32> to vector<8xf32>
    %9 = vector.shape_cast %8 : vector<8xf32> to vector<8x1xf32>
    %cst_8 = arith.constant 6.400000e+01 : f32
    %10 = vector.broadcast %cst_8 : f32 to vector<8x1xf32>
    %11 = arith.divf %9, %10 : vector<8x1xf32>
    %12 = vector.broadcast %11 : vector<8x1xf32> to vector<8x64xf32>
    %13 = arith.subf %5, %12 : vector<8x64xf32>
    %14 = arith.mulf %13, %13 : vector<8x64xf32>
    %cst_9 = arith.constant dense<0.000000e+00> : vector<8xf32>
    %15 = vector.multi_reduction <add>, %14, %cst_9 [1] : vector<8x64xf32> to vector<8xf32>
    %16 = vector.shape_cast %15 : vector<8xf32> to vector<8x1xf32>
    %cst_10 = arith.constant 6.400000e+01 : f32
    %17 = vector.broadcast %cst_10 : f32 to vector<8x1xf32>
    %18 = arith.divf %16, %17 : vector<8x1xf32>
    %cst_11 = arith.constant 9.99999996E-13 : f32
    %19 = vector.broadcast %cst_11 : f32 to vector<8x1xf32>
    %20 = arith.addf %18, %19 : vector<8x1xf32>
    %21 = math.rsqrt %20 : vector<8x1xf32>
    %22 = vector.broadcast %21 : vector<8x1xf32> to vector<8x64xf32>
    %23 = arith.mulf %13, %22 : vector<8x64xf32>
    %24 = vector.broadcast %6 : vector<1x64xf32> to vector<8x64xf32>
    %25 = arith.mulf %23, %24 : vector<8x64xf32>
    %26 = vector.broadcast %7 : vector<1x64xf32> to vector<8x64xf32>
    %27 = arith.addf %25, %26 : vector<8x64xf32>
    %28 = arith.truncf %27 : vector<8x64xf32> to vector<8x64xbf16>
    %c0_12 = arith.constant 0 : index
    %c0_13 = arith.constant 0 : index
    %c0_14 = arith.constant 0 : index
    %29 = vector.load %arg5[%c0_12, %c0_13, %c0_14] : memref<2x64x64xbf16, #tpu.memory_space<vmem>>, vector<1x64x64xbf16>
    %30 = vector.shape_cast %29 : vector<1x64x64xbf16> to vector<64x64xbf16>
    %cst_15 = arith.constant dense<0.000000e+00> : vector<8x64xf32>
    %31 = tpu.matmul %28, %30, %cst_15 {dimension_numbers = #tpu.dot_dimension_numbers<[1], [0], [0], [1], [0, 0, 1, 1], [], []>} : vector<8x64xbf16>, vector<64x64xbf16>, vector<8x64xf32> -> vector<8x64xf32>
    %c0_16 = arith.constant 0 : index
    %c0_17 = arith.constant 0 : index
    %c0_18 = arith.constant 0 : index
    %32 = vector.load %arg8[%c0_16, %c0_17, %c0_18] : memref<2x6x64xf32, #tpu.memory_space<vmem>>, vector<1x1x64xf32>
    %33 = vector.shape_cast %32 : vector<1x1x64xf32> to vector<1x64xf32>
    %34 = vector.broadcast %33 : vector<1x64xf32> to vector<8x64xf32>
    %35 = arith.addf %31, %34 : vector<8x64xf32>
    %36 = arith.addf %35, %27 : vector<8x64xf32>
    %c0_19 = arith.constant 0 : index
    %c2_20 = arith.constant 2 : index
    %c0_21 = arith.constant 0 : index
    %37 = vector.load %arg8[%c0_19, %c2_20, %c0_21] : memref<2x6x64xf32, #tpu.memory_space<vmem>>, vector<1x1x64xf32>
    %38 = vector.shape_cast %37 : vector<1x1x64xf32> to vector<1x64xf32>
    %c0_22 = arith.constant 0 : index
    %c3 = arith.constant 3 : index
    %c0_23 = arith.constant 0 : index
    %39 = vector.load %arg8[%c0_22, %c3, %c0_23] : memref<2x6x64xf32, #tpu.memory_space<vmem>>, vector<1x1x64xf32>
    %40 = vector.shape_cast %39 : vector<1x1x64xf32> to vector<1x64xf32>
    %cst_24 = arith.constant dense<0.000000e+00> : vector<8xf32>
    %41 = vector.multi_reduction <add>, %36, %cst_24 [1] : vector<8x64xf32> to vector<8xf32>
    %42 = vector.shape_cast %41 : vector<8xf32> to vector<8x1xf32>
    %cst_25 = arith.constant 6.400000e+01 : f32
    %43 = vector.broadcast %cst_25 : f32 to vector<8x1xf32>
    %44 = arith.divf %42, %43 : vector<8x1xf32>
    %45 = vector.broadcast %44 : vector<8x1xf32> to vector<8x64xf32>
    %46 = arith.subf %36, %45 : vector<8x64xf32>
    %47 = arith.mulf %46, %46 : vector<8x64xf32>
    %cst_26 = arith.constant dense<0.000000e+00> : vector<8xf32>
    %48 = vector.multi_reduction <add>, %47, %cst_26 [1] : vector<8x64xf32> to vector<8xf32>
    %49 = vector.shape_cast %48 : vector<8xf32> to vector<8x1xf32>
    %cst_27 = arith.constant 6.400000e+01 : f32
    %50 = vector.broadcast %cst_27 : f32 to vector<8x1xf32>
    %51 = arith.divf %49, %50 : vector<8x1xf32>
    %cst_28 = arith.constant 9.99999996E-13 : f32
    %52 = vector.broadcast %cst_28 : f32 to vector<8x1xf32>
    %53 = arith.addf %51, %52 : vector<8x1xf32>
    %54 = math.rsqrt %53 : vector<8x1xf32>
    %55 = vector.broadcast %54 : vector<8x1xf32> to vector<8x64xf32>
    %56 = arith.mulf %46, %55 : vector<8x64xf32>
    %57 = vector.broadcast %38 : vector<1x64xf32> to vector<8x64xf32>
    %58 = arith.mulf %56, %57 : vector<8x64xf32>
    %59 = vector.broadcast %40 : vector<1x64xf32> to vector<8x64xf32>
    %60 = arith.addf %58, %59 : vector<8x64xf32>
    %61 = arith.truncf %60 : vector<8x64xf32> to vector<8x64xbf16>
    %c0_29 = arith.constant 0 : index
    %c0_30 = arith.constant 0 : index
    %c0_31 = arith.constant 0 : index
    %62 = vector.load %arg6[%c0_29, %c0_30, %c0_31] : memref<2x64x256xbf16, #tpu.memory_space<vmem>>, vector<1x64x256xbf16>
    %63 = vector.shape_cast %62 : vector<1x64x256xbf16> to vector<64x256xbf16>
    %cst_32 = arith.constant dense<0.000000e+00> : vector<8x256xf32>
    %64 = tpu.matmul %61, %63, %cst_32 {dimension_numbers = #tpu.dot_dimension_numbers<[1], [0], [0], [1], [0, 0, 1, 1], [], []>} : vector<8x64xbf16>, vector<64x256xbf16>, vector<8x256xf32> -> vector<8x256xf32>
    %c0_33 = arith.constant 0 : index
    %c0_34 = arith.constant 0 : index
    %c0_35 = arith.constant 0 : index
    %65 = vector.load %arg9[%c0_33, %c0_34, %c0_35] : memref<2x1x256xf32, #tpu.memory_space<vmem>>, vector<1x1x256xf32>
    %66 = vector.shape_cast %65 : vector<1x1x256xf32> to vector<1x256xf32>
    %67 = vector.broadcast %66 : vector<1x256xf32> to vector<8x256xf32>
    %68 = arith.addf %64, %67 : vector<8x256xf32>
    %cst_36 = arith.constant 5.000000e-01 : f32
    %69 = vector.broadcast %cst_36 : f32 to vector<8x256xf32>
    %70 = arith.mulf %69, %68 : vector<8x256xf32>
    %cst_37 = arith.constant 4.471500e-02 : f32
    %71 = vector.broadcast %cst_37 : f32 to vector<8x256xf32>
    %72 = arith.mulf %71, %68 : vector<8x256xf32>
    %73 = arith.mulf %72, %68 : vector<8x256xf32>
    %74 = arith.mulf %73, %68 : vector<8x256xf32>
    %75 = arith.addf %68, %74 : vector<8x256xf32>
    %cst_38 = arith.constant 0.797884583 : f32
    %76 = vector.broadcast %cst_38 : f32 to vector<8x256xf32>
    %77 = arith.mulf %76, %75 : vector<8x256xf32>
    %78 = math.tanh %77 : vector<8x256xf32>
    %cst_39 = arith.constant 1.000000e+00 : f32
    %79 = vector.broadcast %cst_39 : f32 to vector<8x256xf32>
    %80 = arith.addf %79, %78 : vector<8x256xf32>
    %81 = arith.mulf %70, %80 : vector<8x256xf32>
    %82 = arith.truncf %81 : vector<8x256xf32> to vector<8x256xbf16>
    %c0_40 = arith.constant 0 : index
    %c0_41 = arith.constant 0 : index
    %c0_42 = arith.constant 0 : index
    %83 = vector.load %arg7[%c0_40, %c0_41, %c0_42] : memref<2x256x64xbf16, #tpu.memory_space<vmem>>, vector<1x256x64xbf16>
    %84 = vector.shape_cast %83 : vector<1x256x64xbf16> to vector<256x64xbf16>
    %cst_43 = arith.constant dense<0.000000e+00> : vector<8x64xf32>
    %85 = tpu.matmul %82, %84, %cst_43 {dimension_numbers = #tpu.dot_dimension_numbers<[1], [0], [0], [1], [0, 0, 1, 1], [], []>} : vector<8x256xbf16>, vector<256x64xbf16>, vector<8x64xf32> -> vector<8x64xf32>
    %c0_44 = arith.constant 0 : index
    %c1_45 = arith.constant 1 : index
    %c0_46 = arith.constant 0 : index
    %86 = vector.load %arg8[%c0_44, %c1_45, %c0_46] : memref<2x6x64xf32, #tpu.memory_space<vmem>>, vector<1x1x64xf32>
    %87 = vector.shape_cast %86 : vector<1x1x64xf32> to vector<1x64xf32>
    %88 = vector.broadcast %87 : vector<1x64xf32> to vector<8x64xf32>
    %89 = arith.addf %85, %88 : vector<8x64xf32>
    %90 = arith.addf %89, %60 : vector<8x64xf32>
    %c0_47 = arith.constant 0 : index
    %c4 = arith.constant 4 : index
    %c0_48 = arith.constant 0 : index
    %91 = vector.load %arg8[%c0_47, %c4, %c0_48] : memref<2x6x64xf32, #tpu.memory_space<vmem>>, vector<1x1x64xf32>
    %92 = vector.shape_cast %91 : vector<1x1x64xf32> to vector<1x64xf32>
    %c0_49 = arith.constant 0 : index
    %c5 = arith.constant 5 : index
    %c0_50 = arith.constant 0 : index
    %93 = vector.load %arg8[%c0_49, %c5, %c0_50] : memref<2x6x64xf32, #tpu.memory_space<vmem>>, vector<1x1x64xf32>
    %94 = vector.shape_cast %93 : vector<1x1x64xf32> to vector<1x64xf32>
    %cst_51 = arith.constant dense<0.000000e+00> : vector<8xf32>
    %95 = vector.multi_reduction <add>, %90, %cst_51 [1] : vector<8x64xf32> to vector<8xf32>
    %96 = vector.shape_cast %95 : vector<8xf32> to vector<8x1xf32>
    %cst_52 = arith.constant 6.400000e+01 : f32
    %97 = vector.broadcast %cst_52 : f32 to vector<8x1xf32>
    %98 = arith.divf %96, %97 : vector<8x1xf32>
    %99 = vector.broadcast %98 : vector<8x1xf32> to vector<8x64xf32>
    %100 = arith.subf %90, %99 : vector<8x64xf32>
    %101 = arith.mulf %100, %100 : vector<8x64xf32>
    %cst_53 = arith.constant dense<0.000000e+00> : vector<8xf32>
    %102 = vector.multi_reduction <add>, %101, %cst_53 [1] : vector<8x64xf32> to vector<8xf32>
    %103 = vector.shape_cast %102 : vector<8xf32> to vector<8x1xf32>
    %cst_54 = arith.constant 6.400000e+01 : f32
    %104 = vector.broadcast %cst_54 : f32 to vector<8x1xf32>
    %105 = arith.divf %103, %104 : vector<8x1xf32>
    %cst_55 = arith.constant 9.99999996E-13 : f32
    %106 = vector.broadcast %cst_55 : f32 to vector<8x1xf32>
    %107 = arith.addf %105, %106 : vector<8x1xf32>
    %108 = math.rsqrt %107 : vector<8x1xf32>
    %109 = vector.broadcast %108 : vector<8x1xf32> to vector<8x64xf32>
    %110 = arith.mulf %100, %109 : vector<8x64xf32>
    %111 = vector.broadcast %92 : vector<1x64xf32> to vector<8x64xf32>
    %112 = arith.mulf %110, %111 : vector<8x64xf32>
    %113 = vector.broadcast %94 : vector<1x64xf32> to vector<8x64xf32>
    %114 = arith.addf %112, %113 : vector<8x64xf32>
    %115 = arith.truncf %114 : vector<8x64xf32> to vector<8x64xbf16>
    %c1_56 = arith.constant 1 : index
    %c0_57 = arith.constant 0 : index
    %c0_58 = arith.constant 0 : index
    %116 = vector.load %arg5[%c1_56, %c0_57, %c0_58] : memref<2x64x64xbf16, #tpu.memory_space<vmem>>, vector<1x64x64xbf16>
    %117 = vector.shape_cast %116 : vector<1x64x64xbf16> to vector<64x64xbf16>
    %cst_59 = arith.constant dense<0.000000e+00> : vector<8x64xf32>
    %118 = tpu.matmul %115, %117, %cst_59 {dimension_numbers = #tpu.dot_dimension_numbers<[1], [0], [0], [1], [0, 0, 1, 1], [], []>} : vector<8x64xbf16>, vector<64x64xbf16>, vector<8x64xf32> -> vector<8x64xf32>
    %c1_60 = arith.constant 1 : index
    %c0_61 = arith.constant 0 : index
    %c0_62 = arith.constant 0 : index
    %119 = vector.load %arg8[%c1_60, %c0_61, %c0_62] : memref<2x6x64xf32, #tpu.memory_space<vmem>>, vector<1x1x64xf32>
    %120 = vector.shape_cast %119 : vector<1x1x64xf32> to vector<1x64xf32>
    %121 = vector.broadcast %120 : vector<1x64xf32> to vector<8x64xf32>
    %122 = arith.addf %118, %121 : vector<8x64xf32>
    %123 = arith.addf %122, %114 : vector<8x64xf32>
    %c1_63 = arith.constant 1 : index
    %c2_64 = arith.constant 2 : index
    %c0_65 = arith.constant 0 : index
    %124 = vector.load %arg8[%c1_63, %c2_64, %c0_65] : memref<2x6x64xf32, #tpu.memory_space<vmem>>, vector<1x1x64xf32>
    %125 = vector.shape_cast %124 : vector<1x1x64xf32> to vector<1x64xf32>
    %c1_66 = arith.constant 1 : index
    %c3_67 = arith.constant 3 : index
    %c0_68 = arith.constant 0 : index
    %126 = vector.load %arg8[%c1_66, %c3_67, %c0_68] : memref<2x6x64xf32, #tpu.memory_space<vmem>>, vector<1x1x64xf32>
    %127 = vector.shape_cast %126 : vector<1x1x64xf32> to vector<1x64xf32>
    %cst_69 = arith.constant dense<0.000000e+00> : vector<8xf32>
    %128 = vector.multi_reduction <add>, %123, %cst_69 [1] : vector<8x64xf32> to vector<8xf32>
    %129 = vector.shape_cast %128 : vector<8xf32> to vector<8x1xf32>
    %cst_70 = arith.constant 6.400000e+01 : f32
    %130 = vector.broadcast %cst_70 : f32 to vector<8x1xf32>
    %131 = arith.divf %129, %130 : vector<8x1xf32>
    %132 = vector.broadcast %131 : vector<8x1xf32> to vector<8x64xf32>
    %133 = arith.subf %123, %132 : vector<8x64xf32>
    %134 = arith.mulf %133, %133 : vector<8x64xf32>
    %cst_71 = arith.constant dense<0.000000e+00> : vector<8xf32>
    %135 = vector.multi_reduction <add>, %134, %cst_71 [1] : vector<8x64xf32> to vector<8xf32>
    %136 = vector.shape_cast %135 : vector<8xf32> to vector<8x1xf32>
    %cst_72 = arith.constant 6.400000e+01 : f32
    %137 = vector.broadcast %cst_72 : f32 to vector<8x1xf32>
    %138 = arith.divf %136, %137 : vector<8x1xf32>
    %cst_73 = arith.constant 9.99999996E-13 : f32
    %139 = vector.broadcast %cst_73 : f32 to vector<8x1xf32>
    %140 = arith.addf %138, %139 : vector<8x1xf32>
    %141 = math.rsqrt %140 : vector<8x1xf32>
    %142 = vector.broadcast %141 : vector<8x1xf32> to vector<8x64xf32>
    %143 = arith.mulf %133, %142 : vector<8x64xf32>
    %144 = vector.broadcast %125 : vector<1x64xf32> to vector<8x64xf32>
    %145 = arith.mulf %143, %144 : vector<8x64xf32>
    %146 = vector.broadcast %127 : vector<1x64xf32> to vector<8x64xf32>
    %147 = arith.addf %145, %146 : vector<8x64xf32>
    %148 = arith.truncf %147 : vector<8x64xf32> to vector<8x64xbf16>
    %c1_74 = arith.constant 1 : index
    %c0_75 = arith.constant 0 : index
    %c0_76 = arith.constant 0 : index
    %149 = vector.load %arg6[%c1_74, %c0_75, %c0_76] : memref<2x64x256xbf16, #tpu.memory_space<vmem>>, vector<1x64x256xbf16>
    %150 = vector.shape_cast %149 : vector<1x64x256xbf16> to vector<64x256xbf16>
    %cst_77 = arith.constant dense<0.000000e+00> : vector<8x256xf32>
    %151 = tpu.matmul %148, %150, %cst_77 {dimension_numbers = #tpu.dot_dimension_numbers<[1], [0], [0], [1], [0, 0, 1, 1], [], []>} : vector<8x64xbf16>, vector<64x256xbf16>, vector<8x256xf32> -> vector<8x256xf32>
    %c1_78 = arith.constant 1 : index
    %c0_79 = arith.constant 0 : index
    %c0_80 = arith.constant 0 : index
    %152 = vector.load %arg9[%c1_78, %c0_79, %c0_80] : memref<2x1x256xf32, #tpu.memory_space<vmem>>, vector<1x1x256xf32>
    %153 = vector.shape_cast %152 : vector<1x1x256xf32> to vector<1x256xf32>
    %154 = vector.broadcast %153 : vector<1x256xf32> to vector<8x256xf32>
    %155 = arith.addf %151, %154 : vector<8x256xf32>
    %cst_81 = arith.constant 5.000000e-01 : f32
    %156 = vector.broadcast %cst_81 : f32 to vector<8x256xf32>
    %157 = arith.mulf %156, %155 : vector<8x256xf32>
    %cst_82 = arith.constant 4.471500e-02 : f32
    %158 = vector.broadcast %cst_82 : f32 to vector<8x256xf32>
    %159 = arith.mulf %158, %155 : vector<8x256xf32>
    %160 = arith.mulf %159, %155 : vector<8x256xf32>
    %161 = arith.mulf %160, %155 : vector<8x256xf32>
    %162 = arith.addf %155, %161 : vector<8x256xf32>
    %cst_83 = arith.constant 0.797884583 : f32
    %163 = vector.broadcast %cst_83 : f32 to vector<8x256xf32>
    %164 = arith.mulf %163, %162 : vector<8x256xf32>
    %165 = math.tanh %164 : vector<8x256xf32>
    %cst_84 = arith.constant 1.000000e+00 : f32
    %166 = vector.broadcast %cst_84 : f32 to vector<8x256xf32>
    %167 = arith.addf %166, %165 : vector<8x256xf32>
    %168 = arith.mulf %157, %167 : vector<8x256xf32>
    %169 = arith.truncf %168 : vector<8x256xf32> to vector<8x256xbf16>
    %c1_85 = arith.constant 1 : index
    %c0_86 = arith.constant 0 : index
    %c0_87 = arith.constant 0 : index
    %170 = vector.load %arg7[%c1_85, %c0_86, %c0_87] : memref<2x256x64xbf16, #tpu.memory_space<vmem>>, vector<1x256x64xbf16>
    %171 = vector.shape_cast %170 : vector<1x256x64xbf16> to vector<256x64xbf16>
    %cst_88 = arith.constant dense<0.000000e+00> : vector<8x64xf32>
    %172 = tpu.matmul %169, %171, %cst_88 {dimension_numbers = #tpu.dot_dimension_numbers<[1], [0], [0], [1], [0, 0, 1, 1], [], []>} : vector<8x256xbf16>, vector<256x64xbf16>, vector<8x64xf32> -> vector<8x64xf32>
    %c1_89 = arith.constant 1 : index
    %c1_90 = arith.constant 1 : index
    %c0_91 = arith.constant 0 : index
    %173 = vector.load %arg8[%c1_89, %c1_90, %c0_91] : memref<2x6x64xf32, #tpu.memory_space<vmem>>, vector<1x1x64xf32>
    %174 = vector.shape_cast %173 : vector<1x1x64xf32> to vector<1x64xf32>
    %175 = vector.broadcast %174 : vector<1x64xf32> to vector<8x64xf32>
    %176 = arith.addf %172, %175 : vector<8x64xf32>
    %177 = arith.addf %176, %147 : vector<8x64xf32>
    %c1_92 = arith.constant 1 : index
    %c4_93 = arith.constant 4 : index
    %c0_94 = arith.constant 0 : index
    %178 = vector.load %arg8[%c1_92, %c4_93, %c0_94] : memref<2x6x64xf32, #tpu.memory_space<vmem>>, vector<1x1x64xf32>
    %179 = vector.shape_cast %178 : vector<1x1x64xf32> to vector<1x64xf32>
    %c1_95 = arith.constant 1 : index
    %c5_96 = arith.constant 5 : index
    %c0_97 = arith.constant 0 : index
    %180 = vector.load %arg8[%c1_95, %c5_96, %c0_97] : memref<2x6x64xf32, #tpu.memory_space<vmem>>, vector<1x1x64xf32>
    %181 = vector.shape_cast %180 : vector<1x1x64xf32> to vector<1x64xf32>
    %cst_98 = arith.constant dense<0.000000e+00> : vector<8xf32>
    %182 = vector.multi_reduction <add>, %177, %cst_98 [1] : vector<8x64xf32> to vector<8xf32>
    %183 = vector.shape_cast %182 : vector<8xf32> to vector<8x1xf32>
    %cst_99 = arith.constant 6.400000e+01 : f32
    %184 = vector.broadcast %cst_99 : f32 to vector<8x1xf32>
    %185 = arith.divf %183, %184 : vector<8x1xf32>
    %186 = vector.broadcast %185 : vector<8x1xf32> to vector<8x64xf32>
    %187 = arith.subf %177, %186 : vector<8x64xf32>
    %188 = arith.mulf %187, %187 : vector<8x64xf32>
    %cst_100 = arith.constant dense<0.000000e+00> : vector<8xf32>
    %189 = vector.multi_reduction <add>, %188, %cst_100 [1] : vector<8x64xf32> to vector<8xf32>
    %190 = vector.shape_cast %189 : vector<8xf32> to vector<8x1xf32>
    %cst_101 = arith.constant 6.400000e+01 : f32
    %191 = vector.broadcast %cst_101 : f32 to vector<8x1xf32>
    %192 = arith.divf %190, %191 : vector<8x1xf32>
    %cst_102 = arith.constant 9.99999996E-13 : f32
    %193 = vector.broadcast %cst_102 : f32 to vector<8x1xf32>
    %194 = arith.addf %192, %193 : vector<8x1xf32>
    %195 = math.rsqrt %194 : vector<8x1xf32>
    %196 = vector.broadcast %195 : vector<8x1xf32> to vector<8x64xf32>
    %197 = arith.mulf %187, %196 : vector<8x64xf32>
    %198 = vector.broadcast %179 : vector<1x64xf32> to vector<8x64xf32>
    %199 = arith.mulf %197, %198 : vector<8x64xf32>
    %200 = vector.broadcast %181 : vector<1x64xf32> to vector<8x64xf32>
    %201 = arith.addf %199, %200 : vector<8x64xf32>
    %202 = arith.truncf %201 : vector<8x64xf32> to vector<8x64xbf16>
    %c0_103 = arith.constant 0 : index
    %c0_104 = arith.constant 0 : index
    %203 = vector.load %arg10[%c0_103, %c0_104] : memref<64x128xbf16, #tpu.memory_space<vmem>>, vector<64x128xbf16>
    %cst_105 = arith.constant dense<0.000000e+00> : vector<8x128xf32>
    %204 = tpu.matmul %202, %203, %cst_105 {dimension_numbers = #tpu.dot_dimension_numbers<[1], [0], [0], [1], [0, 0, 1, 1], [], []>} : vector<8x64xbf16>, vector<64x128xbf16>, vector<8x128xf32> -> vector<8x128xf32>
    %c0_106 = arith.constant 0 : index
    %c0_107 = arith.constant 0 : index
    %205 = vector.load %arg2[%c0_106, %c0_107] : memref<8x32xbf16, #tpu.memory_space<vmem>>, vector<8x32xbf16>
    %c0_108 = arith.constant 0 : index
    %c0_109 = arith.constant 0 : index
    %206 = vector.load %arg11[%c0_108, %c0_109] : memref<32x128xbf16, #tpu.memory_space<vmem>>, vector<32x128xbf16>
    %cst_110 = arith.constant dense<0.000000e+00> : vector<8x128xf32>
    %207 = tpu.matmul %205, %206, %cst_110 {dimension_numbers = #tpu.dot_dimension_numbers<[1], [0], [0], [1], [0, 0, 1, 1], [], []>} : vector<8x32xbf16>, vector<32x128xbf16>, vector<8x128xf32> -> vector<8x128xf32>
    %208 = arith.addf %204, %207 : vector<8x128xf32>
    %c0_111 = arith.constant 0 : index
    %c0_112 = arith.constant 0 : index
    %209 = vector.load %arg12[%c0_111, %c0_112] : memref<1x128xf32, #tpu.memory_space<vmem>>, vector<1x128xf32>
    %210 = vector.broadcast %209 : vector<1x128xf32> to vector<8x128xf32>
    %211 = arith.addf %208, %210 : vector<8x128xf32>
    %cst_113 = arith.constant 0.000000e+00 : f32
    %212 = vector.broadcast %cst_113 : f32 to vector<8x128xf32>
    %213 = arith.maximumf %211, %212 : vector<8x128xf32>
    %214 = arith.mulf %213, %213 : vector<8x128xf32>
    %cst_114 = arith.constant dense<0.000000e+00> : vector<8xf32>
    %215 = vector.multi_reduction <add>, %214, %cst_114 [1] : vector<8x128xf32> to vector<8xf32>
    %216 = vector.shape_cast %215 : vector<8xf32> to vector<8x1xf32>
    %cst_115 = arith.constant 1.000000e-24 : f32
    %217 = vector.broadcast %cst_115 : f32 to vector<8x1xf32>
    %218 = arith.maximumf %216, %217 : vector<8x1xf32>
    %219 = math.rsqrt %218 : vector<8x1xf32>
    %220 = vector.broadcast %219 : vector<8x1xf32> to vector<8x128xf32>
    %221 = arith.mulf %213, %220 : vector<8x128xf32>
    %c0_116 = arith.constant 0 : index
    %c0_117 = arith.constant 0 : index
    %222 = vector.load %arg13[%c0_116, %c0_117] : memref<8x128xf32, #tpu.memory_space<vmem>>, vector<8x128xf32>
    tpu.vector_store %arg13[%c0_116, %c0_117], %221 {strides = array<i32>} : memref<8x128xf32, #tpu.memory_space<vmem>>, vector<8x128xf32>,
    return
  }
  func.func @transform_0(%arg0: i32) -> (i32, i32) {
    %c0_i32 = arith.constant 0 : i32
    %c0_i32_0 = arith.constant 0 : i32
    return %arg0, %c0_i32 : i32, i32
  }
  func.func @transform_1(%arg0: i32) -> (i32, i32) {
    %c0_i32 = arith.constant 0 : i32
    %c0_i32_0 = arith.constant 0 : i32
    return %arg0, %c0_i32 : i32, i32
  }
  func.func @transform_2(%arg0: i32) -> (i32, i32) {
    %c0_i32 = arith.constant 0 : i32
    %c0_i32_0 = arith.constant 0 : i32
    %c0_i32_1 = arith.constant 0 : i32
    return %c0_i32, %c0_i32_0 : i32, i32
  }
  func.func @transform_3(%arg0: i32) -> (i32, i32) {
    %c0_i32 = arith.constant 0 : i32
    %c0_i32_0 = arith.constant 0 : i32
    %c0_i32_1 = arith.constant 0 : i32
    return %c0_i32, %c0_i32_0 : i32, i32
  }
  func.func @transform_4(%arg0: i32) -> (i32, i32, i32) {
    %c0_i32 = arith.constant 0 : i32
    %c0_i32_0 = arith.constant 0 : i32
    %c0_i32_1 = arith.constant 0 : i32
    %c0_i32_2 = arith.constant 0 : i32
    return %c0_i32, %c0_i32_0, %c0_i32_1 : i32, i32, i32
  }
  func.func @transform_5(%arg0: i32) -> (i32, i32, i32) {
    %c0_i32 = arith.constant 0 : i32
    %c0_i32_0 = arith.constant 0 : i32
    %c0_i32_1 = arith.constant 0 : i32
    %c0_i32_2 = arith.constant 0 : i32
    return %c0_i32, %c0_i32_0, %c0_i32_1 : i32, i32, i32
  }
  func.func @transform_6(%arg0: i32) -> (i32, i32, i32) {
    %c0_i32 = arith.constant 0 : i32
    %c0_i32_0 = arith.constant 0 : i32
    %c0_i32_1 = arith.constant 0 : i32
    %c0_i32_2 = arith.constant 0 : i32
    return %c0_i32, %c0_i32_0, %c0_i32_1 : i32, i32, i32
  }
  func.func @transform_7(%arg0: i32) -> (i32, i32, i32) {
    %c0_i32 = arith.constant 0 : i32
    %c0_i32_0 = arith.constant 0 : i32
    %c0_i32_1 = arith.constant 0 : i32
    %c0_i32_2 = arith.constant 0 : i32
    return %c0_i32, %c0_i32_0, %c0_i32_1 : i32, i32, i32
  }
  func.func @transform_8(%arg0: i32) -> (i32, i32, i32) {
    %c0_i32 = arith.constant 0 : i32
    %c0_i32_0 = arith.constant 0 : i32
    %c0_i32_1 = arith.constant 0 : i32
    %c0_i32_2 = arith.constant 0 : i32
    return %c0_i32, %c0_i32_0, %c0_i32_1 : i32, i32, i32
  }
  func.func @transform_9(%arg0: i32) -> (i32, i32) {
    %c0_i32 = arith.constant 0 : i32
    %c0_i32_0 = arith.constant 0 : i32
    %c0_i32_1 = arith.constant 0 : i32
    return %c0_i32, %c0_i32_0 : i32, i32
  }
  func.func @transform_10(%arg0: i32) -> (i32, i32) {
    %c0_i32 = arith.constant 0 : i32
    %c0_i32_0 = arith.constant 0 : i32
    %c0_i32_1 = arith.constant 0 : i32
    return %c0_i32, %c0_i32_0 : i32, i32
  }
  func.func @transform_11(%arg0: i32) -> (i32, i32) {
    %c0_i32 = arith.constant 0 : i32
    %c0_i32_0 = arith.constant 0 : i32
    %c0_i32_1 = arith.constant 0 : i32
    return %c0_i32, %c0_i32_0 : i32, i32
  }
  func.func @transform_12(%arg0: i32) -> (i32, i32) {
    %c0_i32 = arith.constant 0 : i32
    %c0_i32_0 = arith.constant 0 : i32
    return %arg0, %c0_i32 : i32, i32
  }
}

</mosaic_0001>

<bundles_post_ra>
// kernel: tpu_custom_call.1
= control target key start
LH: loop header
LB: loop body
LE: loop exit
PB: predicated region body
PF: predicated region fallthrough
CT: control target
= control target key end

     0   :  { %v1548_v1 = vmov 0.0   ;;  %vm1549_vm0 = vmmov 0   ;;  %vm65_vm1 = vcmask 261120   ;;  %s1948_s0 = inlined_call_operand.vmem [shape: bf16[8,32], index: 0, kind: input, shape index: {}]   ;;  %s1949_s1 = inlined_call_operand.vmem [shape: bf16[8,32], index: 1, kind: input, shape index: {}]   ;;  %s1950_s2 = inlined_call_operand.vmem [shape: bf16[32,64], index: 2, kind: input, shape index: {}]   ;;  %s1951_s3 = inlined_call_operand.vmem [shape: f32[3,64], index: 3, kind: input, shape index: {}]   ;;  %s1952_s4 = inlined_call_operand.vmem [shape: bf16[2,64,64], index: 4, kind: input, shape index: {}]   ;;  %s1953_s5 = inlined_call_operand.vmem [shape: bf16[2,64,256], index: 5, kind: input, shape index: {}]   ;;  %s1954_s6 = inlined_call_operand.vmem [shape: bf16[2,256,64], index: 6, kind: input, shape index: {}]   ;;  %s1955_s7 = inlined_call_operand.vmem [shape: f32[2,6,64], index: 7, kind: input, shape index: {}]   ;;  %s1956_s8 = inlined_call_operand.vmem [shape: f32[2,1,256], index: 8, kind: input, shape index: {}]   ;;  %s1957_s9 = inlined_call_operand.vmem [shape: bf16[64,128], index: 9, kind: input, shape index: {}]   ;;  %s1958_s10 = inlined_call_operand.vmem [shape: bf16[32,128], index: 10, kind: input, shape index: {}]   ;;  %s1959_s11 = inlined_call_operand.vmem [shape: f32[1,128], index: 11, kind: input, shape index: {}]   ;;  %s1960_s12 = inlined_call_operand.hbm [shape: f32[8,128], index: 12, kind: output, shape index: {}]  }
   0x1   :  { %v1432_v0 = vld [vmem:[%s1950_s2] sm:$0xff]   ;;  %1376 = vmatprep.subr.bf16.mxu0 %v1548_v1  ;;  %1384 = vmatprep.subr.bf16.mxu1 %v1548_v1  ;;  %v1433_v2 = vld [vmem:[%s1950_s2 + $0x8] sm:$0xff]  }
   0x2   :  { %1377 = vmatpush3.bf16.msra.mxu0 %v1432_v0  ;;  %1380 = vmatprep.mubr.msk.bf16.mxu0 %vm1549_vm0, %v1548_v1  ;;  %v43_v3 = vld [vmem:[%s1948_s0] sm:$0xf] }
   0x3   :  { %1378 = vmatprep.subr.bf16.mxu0 %v1548_v1  ;;  %1392 = vmatprep.mubr.msk.bf16.mxu1 %vm1549_vm0, %v1548_v1 }
   0x6   :  { %1379 = vmatpush3.bf16.msra.mxu0 %v1433_v2 }
   0x9   :  { %1381 = vmatmul.mubr.msk.bf16.vlgmr.msra.gmra.mrb[0].mxu0 %vm65_vm1, %v43_v3 }
   0xa   :  { %17 = vsyncpa [#allocation3], 0  ;;  %v1169_v4 = vld [vmem:[%s1951_s3] ss:$0 sm:$0xff]  ;;  %vm111_vm2 = vcmask 523264   ;;  %v1435_v17 = vld [vmem:[%s1952_s4 + $0x8] sm:$0xff]  }
   0xb   :  { %v1434_v16 = vld [vmem:[%s1952_s4] sm:$0xff]   ;;  %v1436_v18 = vld [vmem:[%s1952_s4 + $0x10] sm:$0xff]   ;;  %v1437_v19 = vld [vmem:[%s1952_s4 + $0x18] sm:$0xff]   ;;  %v1550_v51 = vmov 0  }
   0xc   :  { %1385 = vmatpush3.bf16.msra.mxu1 %v1434_v16  ;;  %v1173_v24 = vld [vmem:[%s1951_s3 + $0x1] ss:$0 sm:$0xff]  ;;  %v1174_v26 = vld [vmem:[%s1951_s3 + $0x2] ss:$0 sm:$0xff]  ;;  %v1175_v30 = vld [vmem:[%s1955_s7] ss:$0 sm:$0xff]  ;;  %339 = vmatprep.mubr.bf16.mxu0 %v1550_v51 }
   0xd   :  { %1386 = vmatprep.subr.bf16.mxu1 %v1548_v1  ;;  %v1440_v43 = vld [vmem:[%s1953_s5 + $0x4] ss:$8 sps:$4 sm:$0xff]   ;;  %v1438_v44 = vld [vmem:[%s1953_s5] ss:$8 sps:$4 sm:$0xff]   ;;  %v1443_v45 = vld [vmem:[%s1953_s5 + $0x14] ss:$8 sps:$4 sm:$0xff]  }
   0xe   :  { %307 = vmatprep.subr.bf16.mxu0 %v1440_v43  ;;  %v1441_v46 = vld [vmem:[%s1953_s5 + $0x10] ss:$8 sps:$4 sm:$0xff]   ;;  %v1446_v47 = vld [vmem:[%s1953_s5 + $0x24] ss:$8 sps:$4 sm:$0xff]   ;;  %v1444_v48 = vld [vmem:[%s1953_s5 + $0x20] ss:$8 sps:$4 sm:$0xff]  }
   0xf   :  { %308 = vmatpush1.bf16.msra.mxu0 %v1438_v44  ;;  %v1447_v49 = vld [vmem:[%s1953_s5 + $0x30] ss:$8 sps:$4 sm:$0xff]   ;;  %v1449_v50 = vld [vmem:[%s1953_s5 + $0x34] ss:$8 sps:$4 sm:$0xff]   ;;  %v1181_v56 = vld [vmem:[%s1955_s7 + $0x2] ss:$0 sm:$0xff] }
  0x10   :  { %1387 = vmatpush3.bf16.msra.mxu1 %v1435_v17  ;;  %309 = vmatprep.subr.bf16.mxu0 %v1443_v45  ;;  %v1182_v58 = vld [vmem:[%s1955_s7 + $0x3] ss:$0 sm:$0xff]  ;;  %v1452_v0 = vld [vmem:[%s1954_s6 + $0x48] sm:$0xff]   ;;  %v1454_v3 = vld [vmem:[%s1954_s6 + $0x50] sm:$0xff]  }
  0x11   :  { %1388 = vmatprep.subr.bf16.mxu1 %v1548_v1  ;;  %v1450_v62 = vld [vmem:[%s1954_s6 + $0x40] sm:$0xff]   ;;  %v1453_v2 = vld [vmem:[%s1954_s6 + $0x8] sm:$0xff]  }
  0x12   :  { %v1451_v63 = vld [vmem:[%s1954_s6] sm:$0xff]  }
  0x13   :  { %310 = vmatpush1.bf16.msra.mxu0 %v1441_v46 }
  0x14   :  { %1389 = vmatpush3.bf16.msra.mxu1 %v1436_v18  ;;  %311 = vmatprep.subr.bf16.mxu0 %v1446_v47  ;;  %v252_v18 = vld [vmem:[%s1956_s8] sm:$0x3] }
  0x15   :  { %1390 = vmatprep.subr.bf16.mxu1 %v1548_v1 }
  0x17   :  { %312 = vmatpush1.bf16.msra.mxu0 %v1444_v48 }
  0x18   :  { %1391 = vmatpush3.bf16.msra.mxu1 %v1437_v19  ;;  %313 = vmatprep.subr.bf16.mxu0 %v1449_v50 }
  0x19   :  { %1319 = vmatprep.subr.bf16.mxu1 %v1450_v62 }
  0x1b   :  { %314 = vmatpush1.bf16.msra.mxu0 %v1447_v49  ;;  %v1192_v49 = vld [vmem:[%s1955_s7 + $0x1] ss:$0 sm:$0xff] }
  0x1c   :  { %1396 = vmatprep.subr.bf16.mxu0 %v1548_v1 }
  0xdc   :  { %v103_v5 = vpop.f32.mrb[0].mxu0 }
  0xdd   :  { %v104_v6 = vadd.f32 %v1169_v4, %v103_v5  ;;  %v1382_v7 = vpop.f32.mrb[1].mxu0  ;;  %v1455_v4 = vld [vmem:[%s1954_s6 + $0x10] sm:$0xff]   ;;  %v1456_v5 = vld [vmem:[%s1954_s6 + $0x58] sm:$0xff]  }
  0xde   :  { %v106_v8 = vpop.f32.mrb[2].mxu0  ;;  %v1458_v7 = vld [vmem:[%s1954_s6 + $0x60] sm:$0xff]  }
  0xdf   :  { %v1383_v9 = vpop.f32.mrb[3].mxu0  ;;  %v112_v10 = vsel %vm111_vm2, %v104_v6, 0.0  ;;  %v1459_v8 = vld [vmem:[%s1954_s6 + $0x20] sm:$0xff]  }
  0xe0   :  { %113 = vadd.xlane.f32.xlu0 %v112_v10  ;;  %v1460_v9 = vld [vmem:[%s1954_s6 + $0x68] sm:$0xff]  }
  0xe1   :  { %v1461_v10 = vld [vmem:[%s1954_s6 + $0x28] sm:$0xff]  }
 0x16d   :  { %v114_v11 = vpop.xlane.xlu0 %113 }
 0x16e   :  { %v116_v12 = vmul.f32 0.015625, %v114_v11  ;;  %v1462_v11 = vld [vmem:[%s1954_s6 + $0x70] sm:$0xff]  }
 0x170   :  { %v117_v13 = vsub.f32 %v104_v6, %v116_v12  ;;  %v1457_v6 = vld [vmem:[%s1954_s6 + $0x18] sm:$0xff]   ;;  %v1463_v12 = vld [vmem:[%s1954_s6 + $0x30] sm:$0xff]  }
 0x172   :  { %v118_v14 = vmul.f32 %v117_v13, %v117_v13 }
 0x174   :  { %v119_v15 = vsel %vm111_vm2, %v118_v14, 0.0  ;;  %v1465_v14 = vld [vmem:[%s1954_s6 + $0x38] sm:$0xff]  }
 0x175   :  { %120 = vadd.xlane.f32.xlu0 %v119_v15  ;;  %v254_v15 = vlaneseq }
 0x177   :  { %v1753_v16 = vshrl.u32 %v254_v15, 7 }
 0x179   :  { %v256_v17 = vsub.s32 0, %v1753_v16  ;;  %v260_v19 = vsub.s32 1, %v1753_v16 }
 0x202   :  { %v121_v20 = vpop.xlane.xlu0 %120 }
 0x203   :  { %v122_v21 = vmul.f32 0.015625, %v121_v20  ;;  %v257_v20 = vrot.slane %v252_v18, %v256_v17 }
 0x205   :  { %v123_v22 = vadd.f32 1e-12, %v122_v21  ;;  %v261_v21 = vrot.slane %v252_v18, %v260_v19 }
 0x207   :  { %1504 = vrsqrt.f32 %v123_v22 }
 0x211   :  { %v1505_v23 = vpop.eup %1504 }
 0x212   :  { %v125_v25 = vmul.f32 %v1505_v23, %v117_v13  ;;  %v1464_v13 = vld [vmem:[%s1954_s6 + $0x78] sm:$0xff]  }
 0x214   :  { %v130_v27 = vmul.f32 %v1173_v24, %v125_v25 }
 0x216   :  { %v135_v28 = vadd.f32 %v1174_v26, %v130_v27 }
 0x218   :  { %v136_v29 = vpack.c.bf16 %v135_v28, %v135_v28 }
 0x21a   :  { %1393 = vmatmul.mubr.msk.bf16.vlgmr.msra.gmra.mrb[0].mxu1 %vm111_vm2, %v136_v29 }
 0x21b   :  { %1320 = vmatpush3.bf16.msra.mxu1 %v1451_v63 }
 0x21c   :  { %1321 = vmatprep.subr.bf16.mxu1 %v1452_v0  ;;  %v1466_v0 = vld [vmem:[%s1952_s4 + $0x20] sm:$0xff]  }
 0x21f   :  { %1322 = vmatpush3.bf16.msra.mxu1 %v1453_v2  ;;  %v1468_v2 = vld [vmem:[%s1952_s4 + $0x30] sm:$0xff]  }
 0x220   :  { %1323 = vmatprep.subr.bf16.mxu1 %v1454_v3  ;;  %v1469_v3 = vld [vmem:[%s1952_s4 + $0x38] sm:$0xff]  }
 0x223   :  { %1324 = vmatpush3.bf16.msra.mxu1 %v1455_v4 }
 0x224   :  { %1325 = vmatprep.subr.bf16.mxu1 %v1456_v5 }
 0x227   :  { %1326 = vmatpush3.bf16.msra.mxu1 %v1457_v6 }
 0x228   :  { %1327 = vmatprep.subr.bf16.mxu1 %v1458_v7 }
 0x22b   :  { %1328 = vmatpush3.bf16.msra.mxu1 %v1459_v8  ;;  %v1209_v8 = vld [vmem:[%s1955_s7 + $0x4] ss:$0 sm:$0xff] }
 0x22c   :  { %1329 = vmatprep.subr.bf16.mxu1 %v1460_v9 }
 0x22f   :  { %1330 = vmatpush3.bf16.msra.mxu1 %v1461_v10  ;;  %v1210_v10 = vld [vmem:[%s1955_s7 + $0x5] ss:$0 sm:$0xff] }
 0x230   :  { %1331 = vmatprep.subr.bf16.mxu1 %v1462_v11 }
 0x233   :  { %1332 = vmatpush3.bf16.msra.mxu1 %v1463_v12 }
 0x234   :  { %1333 = vmatprep.subr.bf16.mxu1 %v1464_v13 }
 0x237   :  { %1334 = vmatpush3.bf16.msra.mxu1 %v1465_v14  ;;  %v1220_v14 = vld [vmem:[%s1955_s7 + $0x8] ss:$0 sm:$0xff] }
 0x2ed   :  { %v211_v31 = vpop.f32.mrb[0].mxu1 }
 0x2ee   :  { %v212_v32 = vadd.f32 %v1175_v30, %v211_v31  ;;  %v1394_v33 = vpop.f32.mrb[1].mxu1 }
 0x2ef   :  { %v214_v34 = vpop.f32.mrb[2].mxu1 }
 0x2f0   :  { %v1395_v35 = vpop.f32.mrb[3].mxu1  ;;  %v217_v36 = vadd.f32 %v212_v32, %v135_v28 }
 0x2f2   :  { %v220_v37 = vsel %vm111_vm2, %v217_v36, 0.0 }
 0x2f3   :  { %221 = vadd.xlane.f32.xlu1 %v220_v37 }
 0x380   :  { %v222_v38 = vpop.xlane.xlu1 %221 }
 0x381   :  { %v223_v39 = vmul.f32 0.015625, %v222_v38 }
 0x383   :  { %v224_v40 = vsub.f32 %v217_v36, %v223_v39 }
 0x385   :  { %v225_v41 = vmul.f32 %v224_v40, %v224_v40 }
 0x387   :  { %v226_v42 = vsel %vm111_vm2, %v225_v41, 0.0 }
 0x388   :  { %227 = vadd.xlane.f32.xlu1 %v226_v42 }
 0x415   :  { %v228_v52 = vpop.xlane.xlu1 %227 }
 0x416   :  { %v229_v53 = vmul.f32 0.015625, %v228_v52 }
 0x418   :  { %v230_v54 = vadd.f32 1e-12, %v229_v53 }
 0x41a   :  { %1506 = vrsqrt.f32 %v230_v54 }
 0x424   :  { %v1507_v55 = vpop.eup %1506 }
 0x425   :  { %v232_v57 = vmul.f32 %v1507_v55, %v224_v40 }
 0x427   :  { %v237_v59 = vmul.f32 %v1181_v56, %v232_v57 }
 0x429   :  { %v1698_v60 = vadd.f32 %v1182_v58, %v237_v59 }
 0x42b   :  { %v243_v61 = vpack.c.bf16 %v1698_v60, %v1698_v60 }
 0x42d   :  { %1191 = vmatmul.mubr.msk.bf16.vlgmr.msra.gmra.mrb[4].mxu0 %vm111_vm2, %v243_v61 }
 0x42e   :  { %1404 = vmatprep.mubr.msk.bf16.mxu0 %vm1549_vm0, %v1548_v1  ;;  %1397 = vmatpush3.bf16.msra.mxu0 %v1466_v0  ;;  %v1497_v0 = vld [vmem:[%s1954_s6 + $0xb8] sm:$0xff]  }
 0x42f   :  { %1398 = vmatprep.subr.bf16.mxu0 %v1548_v1 }
 0x500   :  { %v341_v22 = vpop.f32.mrb[4].mxu0 }
 0x501   :  { %v342_v23 = vadd.f32 %v341_v22, %v257_v20  ;;  %v343_v24 = vpop.f32.mrb[5].mxu0 }
 0x502   :  { %v344_v25 = vadd.f32 %v343_v24, %v261_v21  ;;  %v345_v26 = vpop.f32.mrb[6].mxu0 }
 0x503   :  { %v350_v27 = vmul.f32 0.044715, %v342_v23  ;;  %v346_v28 = vpop.f32.mrb[7].mxu0  ;;  %v348_v40 = vmul.f32 0.5, %v342_v23 }
 0x504   :  { %v351_v29 = vmul.f32 0.044715, %v344_v25  ;;  %v349_v42 = vmul.f32 0.5, %v344_v25 }
 0x505   :  { %v352_v30 = vmul.f32 %v350_v27, %v342_v23 }
 0x506   :  { %v353_v31 = vmul.f32 %v351_v29, %v344_v25 }
 0x507   :  { %v354_v32 = vmul.f32 %v352_v30, %v342_v23  ;;  %v1470_v30 = vld [vmem:[%s1953_s5 + $0x40] ss:$8 sps:$4 sm:$0xff]  }
 0x508   :  { %v355_v33 = vmul.f32 %v353_v31, %v344_v25  ;;  %v1475_v31 = vld [vmem:[%s1953_s5 + $0x54] ss:$8 sps:$4 sm:$0xff]  }
 0x509   :  { %v356_v34 = vadd.f32 %v354_v32, %v342_v23  ;;  %v1473_v32 = vld [vmem:[%s1953_s5 + $0x50] ss:$8 sps:$4 sm:$0xff]  }
 0x50a   :  { %v357_v35 = vadd.f32 %v355_v33, %v344_v25  ;;  %v1478_v33 = vld [vmem:[%s1953_s5 + $0x64] ss:$8 sps:$4 sm:$0xff]  }
 0x50b   :  { %v358_v36 = vmul.f32 0.7978846, %v356_v34  ;;  %v1476_v34 = vld [vmem:[%s1953_s5 + $0x60] ss:$8 sps:$4 sm:$0xff]  }
 0x50c   :  { %v359_v37 = vmul.f32 0.7978846, %v357_v35  ;;  %v1479_v35 = vld [vmem:[%s1953_s5 + $0x70] ss:$8 sps:$4 sm:$0xff]  }
 0x50d   :  { %1508 = vtanh.f32 %v358_v36  ;;  %v1481_v36 = vld [vmem:[%s1953_s5 + $0x74] ss:$8 sps:$4 sm:$0xff]  }
 0x50e   :  { %1510 = vtanh.f32 %v359_v37 }
 0x517   :  { %v1509_v38 = vpop.eup %1508 }
 0x518   :  { %v1511_v39 = vpop.eup %1510  ;;  %v362_v41 = vadd.f32 1.0, %v1509_v38 }
 0x519   :  { %v363_v43 = vadd.f32 1.0, %v1511_v39 }
 0x51a   :  { %v364_v44 = vmul.f32 %v362_v41, %v348_v40  ;;  %v1228_v41 = vld [vmem:[%s1955_s7 + $0xa] ss:$0 sm:$0xff] }
 0x51b   :  { %v365_v45 = vmul.f32 %v363_v43, %v349_v42  ;;  %v1229_v43 = vld [vmem:[%s1955_s7 + $0xb] ss:$0 sm:$0xff] }
 0x51c   :  { %v366_v47 = vpack.c.bf16 %v364_v44, %v364_v44 }
 0x51d   :  { %v367_v46 = vpack.c.bf16 %v365_v45, %v365_v45 }
 0x51f   :  { %533 = vmatprep.mubr.bf16.mxu1 %v367_v46 }
 0x520   :  { %534 = vmatmul.mubr.bf16.vlgmr.msra.gmra.mrb[4].mxu1 %v366_v47  ;;  %v1482_v47 = vld [vmem:[%s1954_s6 + $0xc0] sm:$0xff]  }
 0x521   :  { %1346 = vmatprep.subr.bf16.mxu1 %v1482_v47  ;;  %v1501_v47 = vld [vmem:[%s1957_s9 + $0x8] sm:$0xff]  }
 0x5f3   :  { %v1335_v48 = vpop.f32.mrb[4].mxu1 }
 0x5f4   :  { %v1336_v50 = vpop.f32.mrb[5].mxu1 }
 0x5f5   :  { %v1337_v52 = vadd.f32 %v1336_v50, %v1335_v48  ;;  %v1338_v53 = vpop.f32.mrb[6].mxu1  ;;  %v1483_v48 = vld [vmem:[%s1954_s6 + $0x80] sm:$0xff]   ;;  %v1485_v50 = vld [vmem:[%s1954_s6 + $0x88] sm:$0xff]  }
 0x5f6   :  { %v1339_v54 = vpop.f32.mrb[7].mxu1  ;;  %1347 = vmatpush3.bf16.msra.mxu1 %v1483_v48  ;;  %v1487_v53 = vld [vmem:[%s1954_s6 + $0x90] sm:$0xff]  }
 0x5f7   :  { %v536_v55 = vadd.f32 %v1337_v52, %v1192_v49  ;;  %v1484_v49 = vld [vmem:[%s1954_s6 + $0xc8] sm:$0xff]   ;;  %v1486_v52 = vld [vmem:[%s1954_s6 + $0xd0] sm:$0xff]   ;;  %v1488_v54 = vld [vmem:[%s1954_s6 + $0xd8] sm:$0xff]  }
 0x5f8   :  { %1348 = vmatprep.subr.bf16.mxu1 %v1484_v49  ;;  %v1502_v48 = vld [vmem:[%s1957_s9 + $0x10] sm:$0xff]   ;;  %v1503_v49 = vld [vmem:[%s1957_s9 + $0x18] sm:$0xff]  }
 0x5f9   :  { %v541_v56 = vadd.f32 %v536_v55, %v1698_v60  ;;  %v1467_v60 = vld [vmem:[%s1952_s4 + $0x28] sm:$0xff]   ;;  %v1489_v55 = vld [vmem:[%s1954_s6 + $0x98] sm:$0xff]  }
 0x5fa   :  { %1399 = vmatpush3.bf16.msra.mxu0 %v1467_v60  ;;  %1349 = vmatpush3.bf16.msra.mxu1 %v1485_v50  ;;  %v1238_v60 = vld [vmem:[%s1956_s8 + $0x2] sm:$0x3] }
 0x5fb   :  { %v544_v57 = vsel %vm111_vm2, %v541_v56, 0.0  ;;  %1400 = vmatprep.subr.bf16.mxu0 %v1548_v1  ;;  %1350 = vmatprep.subr.bf16.mxu1 %v1486_v52 }
 0x5fc   :  { %545 = vadd.xlane.f32.xlu0 %v544_v57  ;;  %v1491_v57 = vld [vmem:[%s1954_s6 + $0xa0] sm:$0xff]  }
 0x5fe   :  { %1401 = vmatpush3.bf16.msra.mxu0 %v1468_v2  ;;  %1351 = vmatpush3.bf16.msra.mxu1 %v1487_v53  ;;  %v692_v2 = vrot.slane %v1238_v60, %v256_v17 }
 0x5ff   :  { %1402 = vmatprep.subr.bf16.mxu0 %v1548_v1  ;;  %1352 = vmatprep.subr.bf16.mxu1 %v1488_v54 }
 0x602   :  { %1403 = vmatpush3.bf16.msra.mxu0 %v1469_v3  ;;  %1353 = vmatpush3.bf16.msra.mxu1 %v1489_v55  ;;  %v696_v3 = vrot.slane %v1238_v60, %v260_v19  ;;  %v1300_v55 = vld [vmem:[%s1955_s7 + $0xc] ss:$0 sm:$0xff] }
 0x689   :  { %v546_v58 = vpop.xlane.xlu0 %545 }
 0x68a   :  { %v547_v59 = vmul.f32 0.015625, %v546_v58  ;;  %v1492_v58 = vld [vmem:[%s1954_s6 + $0xe8] sm:$0xff]  }
 0x68c   :  { %v548_v61 = vsub.f32 %v541_v56, %v547_v59  ;;  %v1490_v56 = vld [vmem:[%s1954_s6 + $0xe0] sm:$0xff]   ;;  %v1493_v59 = vld [vmem:[%s1954_s6 + $0xa8] sm:$0xff]  }
 0x68d   :  { %1354 = vmatprep.subr.bf16.mxu1 %v1490_v56 }
 0x68e   :  { %v549_v62 = vmul.f32 %v548_v61, %v548_v61  ;;  %1355 = vmatpush3.bf16.msra.mxu1 %v1491_v57  ;;  %v1301_v57 = vld [vmem:[%s1955_s7 + $0xd] ss:$0 sm:$0xff] }
 0x68f   :  { %1356 = vmatprep.subr.bf16.mxu1 %v1492_v58 }
 0x690   :  { %v550_v63 = vsel %vm111_vm2, %v549_v62, 0.0  ;;  %v1495_v62 = vld [vmem:[%s1954_s6 + $0xb0] sm:$0xff]  }
 0x691   :  { %551 = vadd.xlane.f32.xlu1 %v550_v63  ;;  %v1496_v63 = vld [vmem:[%s1954_s6 + $0xf8] sm:$0xff]  }
 0x692   :  { %1357 = vmatpush3.bf16.msra.mxu1 %v1493_v59 }
 0x71e   :  { %v552_v4 = vpop.xlane.xlu1 %551 }
 0x71f   :  { %v553_v5 = vmul.f32 0.015625, %v552_v4 }
 0x721   :  { %v554_v6 = vadd.f32 1e-12, %v553_v5 }
 0x723   :  { %1512 = vrsqrt.f32 %v554_v6 }
 0x72d   :  { %v1513_v7 = vpop.eup %1512 }
 0x72e   :  { %v556_v9 = vmul.f32 %v1513_v7, %v548_v61  ;;  %v1494_v61 = vld [vmem:[%s1954_s6 + $0xf0] sm:$0xff]  }
 0x72f   :  { %1358 = vmatprep.subr.bf16.mxu1 %v1494_v61 }
 0x730   :  { %v561_v11 = vmul.f32 %v1209_v8, %v556_v9  ;;  %1359 = vmatpush3.bf16.msra.mxu1 %v1495_v62 }
 0x731   :  { %1360 = vmatprep.subr.bf16.mxu1 %v1496_v63 }
 0x732   :  { %v566_v12 = vadd.f32 %v1210_v10, %v561_v11 }
 0x734   :  { %v567_v13 = vpack.c.bf16 %v566_v12, %v566_v12  ;;  %1361 = vmatpush3.bf16.msra.mxu1 %v1497_v0 }
 0x736   :  { %1405 = vmatmul.mubr.msk.bf16.vlgmr.msra.gmra.mrb[8].mxu0 %vm111_vm2, %v567_v13 }
 0x737   :  { %774 = vmatprep.mubr.bf16.mxu0 %v1550_v51  ;;  %v1472_v51 = vld [vmem:[%s1953_s5 + $0x44] ss:$8 sps:$4 sm:$0xff]  }
 0x738   :  { %742 = vmatprep.subr.bf16.mxu0 %v1472_v51 }
 0x739   :  { %743 = vmatpush1.bf16.msra.mxu0 %v1470_v30  ;;  %v1281_v30 = vld [vmem:[%s1955_s7 + $0x9] ss:$0 sm:$0xff]  ;;  %s1551_s7 = smov [#allocation2]  }
 0x73a   :  { %744 = vmatprep.subr.bf16.mxu0 %v1475_v31  ;;  %s1161_s28 = sshll.u32 %s1551_s7, 4  ;;  %s1162_s28 = int_to_ptr.vmem [resolvable:$true] %s1161_s28 }
 0x73b   :  { %s1524_s29 = scalar_lea.vmem %s1162_s28, 128  ;;  %p1529_p1 = scmp.lt.s32.totalorder %s1162_s28, %s1162_s28 }
 0x73c   :  { %p1525_p0 = scmp.ne.s32.totalorder %s1162_s28, %s1524_s29  ;;  %p1530_p2 = scmp.lt.s32.totalorder %s1524_s29, %s1524_s29 }
 0x73d   :  { %745 = vmatpush1.bf16.msra.mxu0 %v1473_v32 }
 0x73e   :  { %746 = vmatprep.subr.bf16.mxu0 %v1478_v33  ;;  %p1531_p3 = por %p1530_p2, %p1529_p1 }
 0x740   :  { %p1532_p4 = pnand %p1531_p3, %p1525_p0 }
 0x741   :  { %747 = vmatpush1.bf16.msra.mxu0 %v1476_v34 }
 0x742   :  { %748 = vmatprep.subr.bf16.mxu0 %v1481_v36 }
 0x745   :  { %749 = vmatpush1.bf16.msra.mxu0 %v1479_v35 }
 0x746   :  { %1408 = vmatprep.subr.bf16.mxu0 %v1548_v1 }
 0x809   :  { %v644_v15 = vpop.f32.mrb[8].mxu0 }
 0x80a   :  { %v645_v18 = vadd.f32 %v1220_v14, %v644_v15  ;;  %v1406_v20 = vpop.f32.mrb[9].mxu0 }
 0x80b   :  { %v647_v21 = vpop.f32.mrb[10].mxu0 }
 0x80c   :  { %v1407_v22 = vpop.f32.mrb[11].mxu0  ;;  %v650_v23 = vadd.f32 %v645_v18, %v566_v12 }
 0x80e   :  { %v653_v24 = vsel %vm111_vm2, %v650_v23, 0.0 }
 0x80f   :  { %654 = vadd.xlane.f32.xlu0 %v653_v24 }
 0x89c   :  { %v655_v25 = vpop.xlane.xlu0 %654 }
 0x89d   :  { %v656_v26 = vmul.f32 0.015625, %v655_v25 }
 0x89f   :  { %v657_v27 = vsub.f32 %v650_v23, %v656_v26 }
 0x8a1   :  { %v658_v28 = vmul.f32 %v657_v27, %v657_v27 }
 0x8a3   :  { %v659_v29 = vsel %vm111_vm2, %v658_v28, 0.0 }
 0x8a4   :  { %660 = vadd.xlane.f32.xlu1 %v659_v29 }
 0x931   :  { %v661_v37 = vpop.xlane.xlu1 %660 }
 0x932   :  { %v662_v38 = vmul.f32 0.015625, %v661_v37 }
 0x934   :  { %v663_v39 = vadd.f32 1e-12, %v662_v38  ;;  %v1498_v38 = vld [vmem:[%s1958_s10] sm:$0xff]  }
 0x936   :  { %1514 = vrsqrt.f32 %v663_v39 }
 0x940   :  { %v1515_v40 = vpop.eup %1514 }
 0x941   :  { %v665_v42 = vmul.f32 %v1515_v40, %v657_v27 }
 0x943   :  { %v670_v44 = vmul.f32 %v1228_v41, %v665_v42 }
 0x945   :  { %v1829_v45 = vadd.f32 %v1229_v43, %v670_v44  ;;  %v1499_v44 = vld [vmem:[%s1958_s10 + $0x8] sm:$0xff]  }
 0x947   :  { %v676_v46 = vpack.c.bf16 %v1829_v45, %v1829_v45 }
 0x949   :  { %1247 = vmatmul.mubr.msk.bf16.vlgmr.msra.gmra.mrb[12].mxu0 %vm111_vm2, %v676_v46  ;;  %v1500_v46 = vld [vmem:[%s1957_s9] sm:$0xff]  }
 0x94a   :  { %1412 = vmatprep.mubr.msk.bf16.mxu0 %vm1549_vm0, %v1548_v1  ;;  %1409 = vmatpush3.bf16.msra.mxu0 %v1498_v38 }
 0x94b   :  { %1410 = vmatprep.subr.bf16.mxu0 %v1548_v1 }
 0x94e   :  { %1411 = vmatpush3.bf16.msra.mxu0 %v1499_v44 }
 0x94f   :  { %1416 = vmatprep.subr.bf16.mxu0 %v1548_v1 }
 0xa1c   :  { %v776_v4 = vpop.f32.mrb[12].mxu0 }
 0xa1d   :  { %v777_v5 = vadd.f32 %v776_v4, %v692_v2  ;;  %v778_v6 = vpop.f32.mrb[13].mxu0  ;;  %v1310_v2 = vld [vmem:[%s1959_s11] ss:$0 sm:$0xff] }
 0xa1e   :  { %v779_v7 = vadd.f32 %v778_v6, %v696_v3  ;;  %v780_v8 = vpop.f32.mrb[14].mxu0 }
 0xa1f   :  { %v785_v9 = vmul.f32 0.044715, %v777_v5  ;;  %v781_v10 = vpop.f32.mrb[15].mxu0  ;;  %v783_v19 = vmul.f32 0.5, %v777_v5 }
 0xa20   :  { %v786_v11 = vmul.f32 0.044715, %v779_v7  ;;  %v784_v24 = vmul.f32 0.5, %v779_v7 }
 0xa21   :  { %v787_v12 = vmul.f32 %v785_v9, %v777_v5 }
 0xa22   :  { %v788_v13 = vmul.f32 %v786_v11, %v779_v7 }
 0xa23   :  { %v789_v14 = vmul.f32 %v787_v12, %v777_v5 }
 0xa24   :  { %v790_v15 = vmul.f32 %v788_v13, %v779_v7 }
 0xa25   :  { %v791_v18 = vadd.f32 %v789_v14, %v777_v5 }
 0xa26   :  { %v792_v20 = vadd.f32 %v790_v15, %v779_v7 }
 0xa27   :  { %v793_v21 = vmul.f32 0.7978846, %v791_v18 }
 0xa28   :  { %v794_v22 = vmul.f32 0.7978846, %v792_v20 }
 0xa29   :  { %1516 = vtanh.f32 %v793_v21 }
 0xa2a   :  { %1518 = vtanh.f32 %v794_v22 }
 0xa33   :  { %v1517_v16 = vpop.eup %1516 }
 0xa34   :  { %v1519_v17 = vpop.eup %1518  ;;  %v797_v23 = vadd.f32 1.0, %v1517_v16 }
 0xa35   :  { %v798_v25 = vadd.f32 1.0, %v1519_v17 }
 0xa36   :  { %v799_v26 = vmul.f32 %v797_v23, %v783_v19 }
 0xa37   :  { %v800_v27 = vmul.f32 %v798_v25, %v784_v24 }
 0xa38   :  { %v801_v29 = vpack.c.bf16 %v799_v26, %v799_v26 }
 0xa39   :  { %v802_v28 = vpack.c.bf16 %v800_v27, %v800_v27 }
 0xa3b   :  { %969 = vmatprep.mubr.bf16.mxu1 %v802_v28 }
 0xa3c   :  { %970 = vmatmul.mubr.bf16.vlgmr.msra.gmra.mrb[8].mxu1 %v801_v29 }
 0xb0f   :  { %v1362_v51 = vpop.f32.mrb[8].mxu1 }
 0xb10   :  { %v1363_v31 = vpop.f32.mrb[9].mxu1 }
 0xb11   :  { %v1364_v32 = vadd.f32 %v1363_v31, %v1362_v51  ;;  %v1365_v33 = vpop.f32.mrb[10].mxu1 }
 0xb12   :  { %v1366_v34 = vpop.f32.mrb[11].mxu1 }
 0xb13   :  { %v972_v35 = vadd.f32 %v1364_v32, %v1281_v30 }
 0xb15   :  { %v977_v36 = vadd.f32 %v972_v35, %v1829_v45  ;;  %v1012_v45 = vld [vmem:[%s1949_s1] sm:$0xf] }
 0xb16   :  { %1413 = vmatmul.mubr.msk.bf16.vlgmr.msra.gmra.mrb[16].mxu0 %vm65_vm1, %v1012_v45 }
 0xb17   :  { %v980_v37 = vsel %vm111_vm2, %v977_v36, 0.0  ;;  %1424 = vmatprep.mubr.msk.bf16.mxu0 %vm1549_vm0, %v1548_v1  ;;  %1417 = vmatpush3.bf16.msra.mxu0 %v1500_v46 }
 0xb18   :  { %981 = vadd.xlane.f32.xlu0 %v980_v37  ;;  %1418 = vmatprep.subr.bf16.mxu0 %v1548_v1 }
 0xb1b   :  { %1419 = vmatpush3.bf16.msra.mxu0 %v1501_v47 }
 0xb1c   :  { %1420 = vmatprep.subr.bf16.mxu0 %v1548_v1 }
 0xb1f   :  { %1421 = vmatpush3.bf16.msra.mxu0 %v1502_v48 }
 0xb20   :  { %1422 = vmatprep.subr.bf16.mxu0 %v1548_v1 }
 0xb23   :  { %1423 = vmatpush3.bf16.msra.mxu0 %v1503_v49 }
 0xba5   :  { %v982_v39 = vpop.xlane.xlu0 %981 }
 0xba6   :  { %v983_v40 = vmul.f32 0.015625, %v982_v39 }
 0xba8   :  { %v984_v41 = vsub.f32 %v977_v36, %v983_v40 }
 0xbaa   :  { %v985_v42 = vmul.f32 %v984_v41, %v984_v41 }
 0xbac   :  { %v986_v43 = vsel %vm111_vm2, %v985_v42, 0.0 }
 0xbad   :  { %987 = vadd.xlane.f32.xlu1 %v986_v43 }
 0xbe9   :  { %v1066_v61 = vpop.f32.mrb[16].mxu0 }
 0xbea   :  { %v1414_v62 = vpop.f32.mrb[17].mxu0 }
 0xbeb   :  { %v1069_v63 = vpop.f32.mrb[18].mxu0 }
 0xbec   :  { %v1415_v0 = vpop.f32.mrb[19].mxu0 }
 0xc3a   :  { %v988_v50 = vpop.xlane.xlu1 %987 }
 0xc3b   :  { %v989_v52 = vmul.f32 0.015625, %v988_v50 }
 0xc3d   :  { %v990_v53 = vadd.f32 1e-12, %v989_v52 }
 0xc3f   :  { %1520 = vrsqrt.f32 %v990_v53 }
 0xc49   :  { %v1521_v54 = vpop.eup %1520 }
 0xc4a   :  { %v992_v56 = vmul.f32 %v1521_v54, %v984_v41 }
 0xc4c   :  { %v997_v1 = vmul.f32 %v1300_v55, %v992_v56 }
 0xc4e   :  { %v1002_v58 = vadd.f32 %v1301_v57, %v997_v1 }
 0xc50   :  { %v1003_v59 = vpack.c.bf16 %v1002_v58, %v1002_v58 }
 0xc52   :  { %1425 = vmatmul.mubr.msk.bf16.vlgmr.msra.gmra.mrb[20].mxu0 %vm111_vm2, %v1003_v59 }
 0xd25   :  { %v1133_v60 = vpop.f32.mrb[20].mxu0 }
 0xd26   :  { %v1134_v3 = vadd.f32 %v1133_v60, %v1066_v61  ;;  %v1426_v4 = vpop.f32.mrb[21].mxu0 }
 0xd27   :  { %v1136_v5 = vpop.f32.mrb[22].mxu0 }
 0xd28   :  { %v1146_v6 = vadd.f32 %v1310_v2, %v1134_v3  ;;  %v1427_v7 = vpop.f32.mrb[23].mxu0 }
 0xd2a   :  { %v1147_v8 = vmax.f32 %v1146_v6, 0.0 }
 0xd2c   :  { %v1148_v9 = vmul.f32 %v1147_v8, %v1147_v8 }
 0xd2e   :  { %1149 = vadd.xlane.f32.xlu0 %v1148_v9 }
 0xdbb   :  { %v1150_v10 = vpop.xlane.xlu0 %1149 }
 0xdbc   :  { %v1151_v11 = vmax.f32 %v1150_v10, 1e-24 }
 0xdbe   :  { %1522 = vrsqrt.f32 %v1151_v11 }
 0xdc8   :  { %v1523_v12 = vpop.eup %1522 }
 0xdc9   :  { %v1153_v13 = vmul.f32 %v1523_v12, %v1147_v8 }
 0xdcb   :  { %1154 = vst [vmem:[#allocation2] sm:$0xff] %v1153_v13 }
 0xdcc   :  { %1535 = shalt.err (!%p1532_p4)
}
 0xdcd   :  { %s1536_s13 = scalar_lea.hbm %s1960_s12, 128 }
 0xdce   :  { %p1537_p5 = scmp.ne.s32.totalorder %s1960_s12, %s1536_s13  ;;  %p1540_p6 = scmp.lt.u32.totalorder %s1536_s13, %s1960_s12 }
 0xdd0   :  { %p1542_p7 = pnand %p1540_p6, %p1537_p5 }
 0xdd2   :  { %1545 = shalt.err (!%p1542_p7)
}
 0xdd3   :  { %1164 = dma.vmem_to_hbm [thread:$0]  %s1162_s28, 128, %s1960_s12, [#allocation3]  }
 0xdd4   :  { %1546 = dma.done.wait [#allocation3], 128  }
 0xdd5   :  { %1547 = vsyncadd [#allocation3], 4294967168 }
 0xdd6   :  { %1168 = vsyncpa [#allocation3], 1 }

</bundles_post_ra>
